<compile_context>
chip_gen: v7x
topology: tpu7x:2x2x1
jax: 0.10.0
libtpu: 0.0.40
codegen_flags: <defaults>
</compile_context>

<pallas_src>
import functools

import jax
import jax.numpy as jnp
from jax.experimental import pallas as pl
from jax.experimental.pallas import tpu as pltpu

# Logical (PyTorch) dims and lane/sublane padded dims used by the kernel.
D_IN, H, D_OUT = 21, 200, 7
D_IN_P, H_P = 128, 256          # padded contraction widths (zeros -> no-op)


# ---------------------------------------------------------------------------
# Kernel: all five Linear layers + ReLU fused.  MXU accumulation is always f32
# (preferred_element_type); matmul operand dtype = weight dtype (bf16 fast path
# or f32 parity path); epilogue dtype = bias dtype (bf16 on v6e/v7x, f32 on
# v5e / parity path).  Final layer bias add and output are always f32.
# ---------------------------------------------------------------------------
def _mlp_kernel(x_ref,
                w1_ref, b1_ref, w2_ref, b2_ref, w3_ref, b3_ref,
                w4_ref, b4_ref, w5_ref, b5_ref,
                o_ref, xpad_ref):
    cdt = w1_ref.dtype  # MXU operand dtype

    # Widen the 21 input features to the 128-lane padded contraction width
    # entirely inside VMEM (no HBM-side pad).  Zero-fill first so the padded
    # lanes are exact zeros (they hit w1's zero rows; must not be garbage).
    xpad_ref[...] = jnp.zeros_like(xpad_ref)
    xpad_ref[:, :D_IN] = x_ref[...]
    a = xpad_ref[...].astype(cdt)

    def hidden(a, w_ref, b_ref):
        h = jnp.dot(a, w_ref[...], preferred_element_type=jnp.float32)
        # Epilogue in the bias dtype: bf16 on v6e/v7x (halves VALU epilogue
        # work once the matmuls are bf16), f32 on v5e (no bf16 VPU).
        h = h.astype(b_ref.dtype) + b_ref[...]
        return jnp.maximum(h, 0).astype(cdt)

    a = hidden(a, w1_ref, b1_ref)
    a = hidden(a, w2_ref, b2_ref)
    a = hidden(a, w3_ref, b3_ref)
    a = hidden(a, w4_ref, b4_ref)
    # Final layer: f32 bias add, no ReLU, f32 output.
    y = jnp.dot(a, w5_ref[...], preferred_element_type=jnp.float32) + b5_ref[...]
    o_ref[...] = y.astype(o_ref.dtype)


# ---------------------------------------------------------------------------
# One-time parameter preparation (hoisted out of the per-call path).
# ---------------------------------------------------------------------------
def prepare_params(params, use_bf16=True, bf16_epilogue=None):
    """Pad + cast the 10 parameter arrays into kernel layout once.

    Weights: (in, out), padded with zero rows/cols to (D_IN_P/H_P, H_P/D_OUT),
    cast to bf16 (fast path) or f32 (parity path).
    Biases: (1, out), padded with zeros; hidden biases carry the epilogue dtype
    (bf16 only on chips with a bf16 VPU), final bias stays f32.
    """
    if bf16_epilogue is None:
        kind = jax.devices()[0].device_kind.lower()
        bf16_epilogue = ("v6" in kind) or ("v7" in kind)  # bf16-VPU generations
    wdt = jnp.bfloat16 if use_bf16 else jnp.float32
    edt = jnp.bfloat16 if (use_bf16 and bf16_epilogue) else jnp.float32

    def pw(w, rows, cols):
        return jnp.pad(w, ((0, rows - w.shape[0]), (0, cols - w.shape[1]))).astype(wdt)

    def pb(b, cols, dt):
        return jnp.pad(b, ((0, 0), (0, cols - b.shape[1]))).astype(dt)

    return (
        pw(params["w1"], D_IN_P, H_P), pb(params["b1"], H_P, edt),
        pw(params["w2"], H_P, H_P),    pb(params["b2"], H_P, edt),
        pw(params["w3"], H_P, H_P),    pb(params["b3"], H_P, edt),
        pw(params["w4"], H_P, H_P),    pb(params["b4"], H_P, edt),
        pw(params["w5"], H_P, D_OUT),  pb(params["b5"], D_OUT, jnp.float32),
    )


def _pick_batch_tile(B, block_b):
    """Batch tile (multiple of 8, or == B for tiny batches)."""
    if B <= 8:
        return B                                   # single block; dim == full dim is legal
    if B <= 512:
        # >=2 tiles so both v7x TensorCores get work.
        return max(8, ((-(-B // 2)) + 7) // 8 * 8)
    # Large batch: >=4 tiles (2 per v7x TC) so each core overlaps DMA & compute,
    # capped at block_b for big, roofline-friendly tiles.
    return max(8, min(block_b, (B // 4) // 8 * 8))


@functools.partial(jax.jit, static_argnames=("block_b",))
def sarcos_prime_net(x, kernel_params, *, block_b=None):
    """Forward pass.  x: (B, 21) f32.  kernel_params: output of prepare_params.
    Returns (B, 7) f32."""
    B = x.shape[0]
    if block_b is None:
        block_b = 1024 if B >= 8192 else 512       # bigger tiles at very large B
    tb = _pick_batch_tile(B, block_b)

    def const_spec(a):  # weights/biases: resident in VMEM across all grid steps
        return pl.BlockSpec(a.shape, lambda i: (0, 0))

    return pl.pallas_call(
        _mlp_kernel,
        out_shape=jax.ShapeDtypeStruct((B, D_OUT), jnp.float32),
        grid_spec=pltpu.PrefetchScalarGridSpec(
            num_scalar_prefetch=0,
            grid=(pl.cdiv(B, tb),),
            in_specs=[pl.BlockSpec((tb, D_IN), lambda i: (i, 0))]
                     + [const_spec(a) for a in kernel_params],
            out_specs=pl.BlockSpec((tb, D_OUT), lambda i: (i, 0)),
            scratch_shapes=[pltpu.VMEM((tb, D_IN_P), jnp.float32)],
        ),
        compiler_params=pltpu.CompilerParams(
            dimension_semantics=("parallel",)),
    )(x, *kernel_params)


# ---------------------------------------------------------------------------
# PyTorch-style init and pure-JAX reference (for testing).
# ---------------------------------------------------------------------------
def init_params(key):
    """PyTorch nn.Linear default init: U(-1/sqrt(fan_in), 1/sqrt(fan_in))."""
    dims = [(D_IN, H), (H, H), (H, H), (H, H), (H, D_OUT)]
    params = {}
    for idx, (fan_in, fan_out) in enumerate(dims, start=1):
        key, kw, kb = jax.random.split(key, 3)
        bound = 1.0 / jnp.sqrt(jnp.float32(fan_in))
        params[f"w{idx}"] = jax.random.uniform(
            kw, (fan_in, fan_out), jnp.float32, -bound, bound)
        params[f"b{idx}"] = jax.random.uniform(
            kb, (1, fan_out), jnp.float32, -bound, bound)
    return params


def _reference_forward(x, params):
    a = x
    for i in range(1, 5):
        a = jnp.maximum(a @ params[f"w{i}"] + params[f"b{i}"], 0.0)
    return a @ params["w5"] + params["b5"]


if __name__ == "__main__":
    key = jax.random.PRNGKey(0)
    kp, kx1, kx2 = jax.random.split(key, 3)
    params = init_params(kp)

    kparams_fast = prepare_params(params)                  # bf16 fast path (default)
    kparams_f32 = prepare_params(params, use_bf16=False)   # f32 parity path

    # Small batch: single grid step.
    B1 = 8
    x1 = jax.random.normal(kx1, (B1, D_IN), jnp.float32)
    y1 = jax.block_until_ready(sarcos_prime_net(x1, kparams_fast))
    y1_ref = _reference_forward(x1, params)
    assert y1.shape == (B1, D_OUT)
    assert jnp.allclose(y1, y1_ref, atol=7.5e-2, rtol=7.5e-2)

    # Larger, non-divisible batch: >=2 grid steps + ragged tail block masking.
    B2 = 44
    x2 = jax.random.normal(kx2, (B2, D_IN), jnp.float32)
    y2 = jax.block_until_ready(sarcos_prime_net(x2, kparams_fast))
    y2_ref = _reference_forward(x2, params)
    assert y2.shape == (B2, D_OUT)
    assert jnp.allclose(y2, y2_ref, atol=7.5e-2, rtol=7.5e-2)

    # f32 parity path: tight tolerance against the pure-JAX reference.
    y2_f32 = jax.block_until_ready(sarcos_prime_net(x2, kparams_f32))
    assert jnp.allclose(y2_f32, y2_ref, atol=1e-3, rtol=1e-3)

    print("KERNEL_OK")
</pallas_src>

<mosaic_0001>
module attributes {stable_mosaic.version = 11 : i64} {
  func.func @_mlp_kernel(%arg0: i32, %arg1: memref<8x21xf32, #tpu.memory_space<vmem>>, %arg2: memref<128x256xbf16, #tpu.memory_space<vmem>>, %arg3: memref<1x256xf32, #tpu.memory_space<vmem>>, %arg4: memref<256x256xbf16, #tpu.memory_space<vmem>>, %arg5: memref<1x256xf32, #tpu.memory_space<vmem>>, %arg6: memref<256x256xbf16, #tpu.memory_space<vmem>>, %arg7: memref<1x256xf32, #tpu.memory_space<vmem>>, %arg8: memref<256x256xbf16, #tpu.memory_space<vmem>>, %arg9: memref<1x256xf32, #tpu.memory_space<vmem>>, %arg10: memref<256x7xbf16, #tpu.memory_space<vmem>>, %arg11: memref<1x7xf32, #tpu.memory_space<vmem>>, %arg12: memref<8x7xf32, #tpu.memory_space<vmem>>, %arg13: memref<8x128xf32, #tpu.memory_space<vmem>>) attributes {dimension_semantics = [#tpu.dimension_semantics<parallel>], iteration_bounds = array<i64: 1>, scalar_prefetch = 0 : i64, scratch_operands = 1 : i64, tpu.core_type = #tpu.core_type<tc>, window_params = [{transform_indices = @transform_0, window_bounds = array<i64: 8, 21>}, {pipeline_mode = #tpu.pipeline_mode<synchronous>, transform_indices = @transform_1, window_bounds = array<i64: 128, 256>}, {pipeline_mode = #tpu.pipeline_mode<synchronous>, transform_indices = @transform_2, window_bounds = array<i64: 1, 256>}, {pipeline_mode = #tpu.pipeline_mode<synchronous>, transform_indices = @transform_3, window_bounds = array<i64: 256, 256>}, {pipeline_mode = #tpu.pipeline_mode<synchronous>, transform_indices = @transform_4, window_bounds = array<i64: 1, 256>}, {pipeline_mode = #tpu.pipeline_mode<synchronous>, transform_indices = @transform_5, window_bounds = array<i64: 256, 256>}, {pipeline_mode = #tpu.pipeline_mode<synchronous>, transform_indices = @transform_6, window_bounds = array<i64: 1, 256>}, {pipeline_mode = #tpu.pipeline_mode<synchronous>, transform_indices = @transform_7, window_bounds = array<i64: 256, 256>}, {pipeline_mode = #tpu.pipeline_mode<synchronous>, transform_indices = @transform_8, window_bounds = array<i64: 1, 256>}, {pipeline_mode = #tpu.pipeline_mode<synchronous>, transform_indices = @transform_9, window_bounds = array<i64: 256, 7>}, {pipeline_mode = #tpu.pipeline_mode<synchronous>, transform_indices = @transform_10, window_bounds = array<i64: 1, 7>}, {transform_indices = @transform_11, window_bounds = array<i64: 8, 7>}]} {
    %cst = arith.constant 0.000000e+00 : f32
    %0 = vector.broadcast %cst : f32 to vector<8x128xf32>
    %c0 = arith.constant 0 : index
    %c0_0 = arith.constant 0 : index
    %1 = vector.load %arg13[%c0, %c0_0] : memref<8x128xf32, #tpu.memory_space<vmem>>, vector<8x128xf32>
    tpu.vector_store %arg13[%c0, %c0_0], %0 {strides = array<i32>} : memref<8x128xf32, #tpu.memory_space<vmem>>, vector<8x128xf32>,
    %c0_1 = arith.constant 0 : index
    %c0_2 = arith.constant 0 : index
    %2 = vector.load %arg1[%c0_1, %c0_2] : memref<8x21xf32, #tpu.memory_space<vmem>>, vector<8x21xf32>
    %c0_3 = arith.constant 0 : index
    %c0_4 = arith.constant 0 : index
    %3 = vector.load %arg13[%c0_3, %c0_4] : memref<8x128xf32, #tpu.memory_space<vmem>>, vector<8x21xf32>
    tpu.vector_store %arg13[%c0_3, %c0_4], %2 {strides = array<i32>} : memref<8x128xf32, #tpu.memory_space<vmem>>, vector<8x21xf32>,
    %c0_5 = arith.constant 0 : index
    %c0_6 = arith.constant 0 : index
    %4 = vector.load %arg13[%c0_5, %c0_6] : memref<8x128xf32, #tpu.memory_space<vmem>>, vector<8x128xf32>
    %5 = arith.truncf %4 : vector<8x128xf32> to vector<8x128xbf16>
    %c0_7 = arith.constant 0 : index
    %c0_8 = arith.constant 0 : index
    %6 = vector.load %arg2[%c0_7, %c0_8] : memref<128x256xbf16, #tpu.memory_space<vmem>>, vector<128x256xbf16>
    %cst_9 = arith.constant dense<0.000000e+00> : vector<8x256xf32>
    %7 = tpu.matmul %5, %6, %cst_9 {dimension_numbers = #tpu.dot_dimension_numbers<[1], [0], [0], [1], [0, 0, 1, 1], [], []>} : vector<8x128xbf16>, vector<128x256xbf16>, vector<8x256xf32> -> vector<8x256xf32>
    %c0_10 = arith.constant 0 : index
    %c0_11 = arith.constant 0 : index
    %8 = vector.load %arg3[%c0_10, %c0_11] : memref<1x256xf32, #tpu.memory_space<vmem>>, vector<1x256xf32>
    %9 = vector.broadcast %8 : vector<1x256xf32> to vector<8x256xf32>
    %10 = arith.addf %7, %9 : vector<8x256xf32>
    %cst_12 = arith.constant 0.000000e+00 : f32
    %11 = vector.broadcast %cst_12 : f32 to vector<8x256xf32>
    %12 = arith.maximumf %10, %11 : vector<8x256xf32>
    %13 = arith.truncf %12 : vector<8x256xf32> to vector<8x256xbf16>
    %c0_13 = arith.constant 0 : index
    %c0_14 = arith.constant 0 : index
    %14 = vector.load %arg4[%c0_13, %c0_14] : memref<256x256xbf16, #tpu.memory_space<vmem>>, vector<256x256xbf16>
    %cst_15 = arith.constant dense<0.000000e+00> : vector<8x256xf32>
    %15 = tpu.matmul %13, %14, %cst_15 {dimension_numbers = #tpu.dot_dimension_numbers<[1], [0], [0], [1], [0, 0, 1, 1], [], []>} : vector<8x256xbf16>, vector<256x256xbf16>, vector<8x256xf32> -> vector<8x256xf32>
    %c0_16 = arith.constant 0 : index
    %c0_17 = arith.constant 0 : index
    %16 = vector.load %arg5[%c0_16, %c0_17] : memref<1x256xf32, #tpu.memory_space<vmem>>, vector<1x256xf32>
    %17 = vector.broadcast %16 : vector<1x256xf32> to vector<8x256xf32>
    %18 = arith.addf %15, %17 : vector<8x256xf32>
    %cst_18 = arith.constant 0.000000e+00 : f32
    %19 = vector.broadcast %cst_18 : f32 to vector<8x256xf32>
    %20 = arith.maximumf %18, %19 : vector<8x256xf32>
    %21 = arith.truncf %20 : vector<8x256xf32> to vector<8x256xbf16>
    %c0_19 = arith.constant 0 : index
    %c0_20 = arith.constant 0 : index
    %22 = vector.load %arg6[%c0_19, %c0_20] : memref<256x256xbf16, #tpu.memory_space<vmem>>, vector<256x256xbf16>
    %cst_21 = arith.constant dense<0.000000e+00> : vector<8x256xf32>
    %23 = tpu.matmul %21, %22, %cst_21 {dimension_numbers = #tpu.dot_dimension_numbers<[1], [0], [0], [1], [0, 0, 1, 1], [], []>} : vector<8x256xbf16>, vector<256x256xbf16>, vector<8x256xf32> -> vector<8x256xf32>
    %c0_22 = arith.constant 0 : index
    %c0_23 = arith.constant 0 : index
    %24 = vector.load %arg7[%c0_22, %c0_23] : memref<1x256xf32, #tpu.memory_space<vmem>>, vector<1x256xf32>
    %25 = vector.broadcast %24 : vector<1x256xf32> to vector<8x256xf32>
    %26 = arith.addf %23, %25 : vector<8x256xf32>
    %cst_24 = arith.constant 0.000000e+00 : f32
    %27 = vector.broadcast %cst_24 : f32 to vector<8x256xf32>
    %28 = arith.maximumf %26, %27 : vector<8x256xf32>
    %29 = arith.truncf %28 : vector<8x256xf32> to vector<8x256xbf16>
    %c0_25 = arith.constant 0 : index
    %c0_26 = arith.constant 0 : index
    %30 = vector.load %arg8[%c0_25, %c0_26] : memref<256x256xbf16, #tpu.memory_space<vmem>>, vector<256x256xbf16>
    %cst_27 = arith.constant dense<0.000000e+00> : vector<8x256xf32>
    %31 = tpu.matmul %29, %30, %cst_27 {dimension_numbers = #tpu.dot_dimension_numbers<[1], [0], [0], [1], [0, 0, 1, 1], [], []>} : vector<8x256xbf16>, vector<256x256xbf16>, vector<8x256xf32> -> vector<8x256xf32>
    %c0_28 = arith.constant 0 : index
    %c0_29 = arith.constant 0 : index
    %32 = vector.load %arg9[%c0_28, %c0_29] : memref<1x256xf32, #tpu.memory_space<vmem>>, vector<1x256xf32>
    %33 = vector.broadcast %32 : vector<1x256xf32> to vector<8x256xf32>
    %34 = arith.addf %31, %33 : vector<8x256xf32>
    %cst_30 = arith.constant 0.000000e+00 : f32
    %35 = vector.broadcast %cst_30 : f32 to vector<8x256xf32>
    %36 = arith.maximumf %34, %35 : vector<8x256xf32>
    %37 = arith.truncf %36 : vector<8x256xf32> to vector<8x256xbf16>
    %c0_31 = arith.constant 0 : index
    %c0_32 = arith.constant 0 : index
    %38 = vector.load %arg10[%c0_31, %c0_32] : memref<256x7xbf16, #tpu.memory_space<vmem>>, vector<256x7xbf16>
    %cst_33 = arith.constant dense<0.000000e+00> : vector<8x7xf32>
    %39 = tpu.matmul %37, %38, %cst_33 {dimension_numbers = #tpu.dot_dimension_numbers<[1], [0], [0], [1], [0, 0, 1, 1], [], []>} : vector<8x256xbf16>, vector<256x7xbf16>, vector<8x7xf32> -> vector<8x7xf32>
    %c0_34 = arith.constant 0 : index
    %c0_35 = arith.constant 0 : index
    %40 = vector.load %arg11[%c0_34, %c0_35] : memref<1x7xf32, #tpu.memory_space<vmem>>, vector<1x7xf32>
    %41 = vector.broadcast %40 : vector<1x7xf32> to vector<8x7xf32>
    %42 = arith.addf %39, %41 : vector<8x7xf32>
    %c0_36 = arith.constant 0 : index
    %c0_37 = arith.constant 0 : index
    %43 = vector.load %arg12[%c0_36, %c0_37] : memref<8x7xf32, #tpu.memory_space<vmem>>, vector<8x7xf32>
    tpu.vector_store %arg12[%c0_36, %c0_37], %42 {strides = array<i32>} : memref<8x7xf32, #tpu.memory_space<vmem>>, vector<8x7xf32>,
    return
  }
  func.func @transform_0(%arg0: i32) -> (i32, i32) {
    %c0_i32 = arith.constant 0 : i32
    %c0_i32_0 = arith.constant 0 : i32
    return %arg0, %c0_i32 : i32, i32
  }
  func.func @transform_1(%arg0: i32) -> (i32, i32) {
    %c0_i32 = arith.constant 0 : i32
    %c0_i32_0 = arith.constant 0 : i32
    %c0_i32_1 = arith.constant 0 : i32
    return %c0_i32, %c0_i32_0 : i32, i32
  }
  func.func @transform_2(%arg0: i32) -> (i32, i32) {
    %c0_i32 = arith.constant 0 : i32
    %c0_i32_0 = arith.constant 0 : i32
    %c0_i32_1 = arith.constant 0 : i32
    return %c0_i32, %c0_i32_0 : i32, i32
  }
  func.func @transform_3(%arg0: i32) -> (i32, i32) {
    %c0_i32 = arith.constant 0 : i32
    %c0_i32_0 = arith.constant 0 : i32
    %c0_i32_1 = arith.constant 0 : i32
    return %c0_i32, %c0_i32_0 : i32, i32
  }
  func.func @transform_4(%arg0: i32) -> (i32, i32) {
    %c0_i32 = arith.constant 0 : i32
    %c0_i32_0 = arith.constant 0 : i32
    %c0_i32_1 = arith.constant 0 : i32
    return %c0_i32, %c0_i32_0 : i32, i32
  }
  func.func @transform_5(%arg0: i32) -> (i32, i32) {
    %c0_i32 = arith.constant 0 : i32
    %c0_i32_0 = arith.constant 0 : i32
    %c0_i32_1 = arith.constant 0 : i32
    return %c0_i32, %c0_i32_0 : i32, i32
  }
  func.func @transform_6(%arg0: i32) -> (i32, i32) {
    %c0_i32 = arith.constant 0 : i32
    %c0_i32_0 = arith.constant 0 : i32
    %c0_i32_1 = arith.constant 0 : i32
    return %c0_i32, %c0_i32_0 : i32, i32
  }
  func.func @transform_7(%arg0: i32) -> (i32, i32) {
    %c0_i32 = arith.constant 0 : i32
    %c0_i32_0 = arith.constant 0 : i32
    %c0_i32_1 = arith.constant 0 : i32
    return %c0_i32, %c0_i32_0 : i32, i32
  }
  func.func @transform_8(%arg0: i32) -> (i32, i32) {
    %c0_i32 = arith.constant 0 : i32
    %c0_i32_0 = arith.constant 0 : i32
    %c0_i32_1 = arith.constant 0 : i32
    return %c0_i32, %c0_i32_0 : i32, i32
  }
  func.func @transform_9(%arg0: i32) -> (i32, i32) {
    %c0_i32 = arith.constant 0 : i32
    %c0_i32_0 = arith.constant 0 : i32
    %c0_i32_1 = arith.constant 0 : i32
    return %c0_i32, %c0_i32_0 : i32, i32
  }
  func.func @transform_10(%arg0: i32) -> (i32, i32) {
    %c0_i32 = arith.constant 0 : i32
    %c0_i32_0 = arith.constant 0 : i32
    %c0_i32_1 = arith.constant 0 : i32
    return %c0_i32, %c0_i32_0 : i32, i32
  }
  func.func @transform_11(%arg0: i32) -> (i32, i32) {
    %c0_i32 = arith.constant 0 : i32
    %c0_i32_0 = arith.constant 0 : i32
    return %arg0, %c0_i32 : i32, i32
  }
}

</mosaic_0001>

<bundles_post_ra>
// kernel: sarcos_prime_net.1
= control target key start
LH: loop header
LB: loop body
LE: loop exit
PB: predicated region body
PF: predicated region fallthrough
CT: control target
= control target key end

     0   :  { %16 = vsyncpa [#allocation4], 0  ;;  %s1875_s0 = inlined_call_operand.vmem [shape: f32[8,21], index: 0, kind: input, shape index: {}]   ;;  %s1876_s1 = inlined_call_operand.vmem [shape: bf16[128,256], index: 1, kind: input, shape index: {}]   ;;  %s1877_s2 = inlined_call_operand.vmem [shape: f32[1,256], index: 2, kind: input, shape index: {}]   ;;  %s1878_s3 = inlined_call_operand.hbm [shape: bf16[256,256], index: 3, kind: input, shape index: {}]   ;;  %s1879_s4 = inlined_call_operand.vmem [shape: f32[1,256], index: 4, kind: input, shape index: {}]   ;;  %s1880_s5 = inlined_call_operand.hbm [shape: bf16[256,256], index: 5, kind: input, shape index: {}]   ;;  %s1881_s6 = inlined_call_operand.vmem [shape: f32[1,256], index: 6, kind: input, shape index: {}]   ;;  %s1882_s7 = inlined_call_operand.hbm [shape: bf16[256,256], index: 7, kind: input, shape index: {}]   ;;  %s1883_s8 = inlined_call_operand.vmem [shape: f32[1,256], index: 8, kind: input, shape index: {}]   ;;  %s1884_s9 = inlined_call_operand.vmem [shape: bf16[256,7], index: 9, kind: input, shape index: {}]   ;;  %s1885_s10 = inlined_call_operand.vmem [shape: f32[1,7], index: 10, kind: input, shape index: {}]   ;;  %s1886_s11 = inlined_call_operand.hbm [shape: f32[8,7], index: 11, kind: output, shape index: {}]  }
   0x1   :  { %17 = vsyncpa [#allocation7], 0 }
   0x2   :  { %18 = vsyncpa [#allocation5], 0  ;;  %s1617_s17 = smov [#allocation6]   ;;  %s1618_s19 = smov [#allocation3]  }
   0x3   :  { %s44_s18 = sshll.u32 %s1617_s17, 4  ;;  %s30_s20 = sshll.u32 %s1618_s19, 4  ;;  %s45_s18 = int_to_ptr.vmem [resolvable:$true] %s44_s18  ;;  %s1685_s20 = int_to_ptr.vmem [resolvable:$true] %s30_s20 }
   0x4   :  { %s1523_s23 = scalar_lea.hbm %s1880_s5, 4096 }
   0x5   :  { %p1524_p0 = scmp.ne.s32.totalorder %s1880_s5, %s1523_s23  ;;  %p1527_p1 = scmp.lt.u32.totalorder %s1523_s23, %s1880_s5 }
   0x7   :  { %p1529_p2 = pnand %p1527_p1, %p1524_p0 }
   0x9   :  { %1532 = shalt.err (!%p1529_p2)
}
   0xa   :  { %s1533_s28 = scalar_lea.vmem %s45_s18, 4096  ;;  %p1538_p4 = scmp.lt.s32.totalorder %s45_s18, %s45_s18 }
   0xb   :  { %p1534_p3 = scmp.ne.s32.totalorder %s45_s18, %s1533_s28  ;;  %p1539_p5 = scmp.lt.s32.totalorder %s1533_s28, %s1533_s28 }
   0xd   :  { %p1540_p6 = por %p1539_p5, %p1538_p4 }
   0xf   :  { %p1541_p7 = pnand %p1540_p6, %p1534_p3 }
  0x11   :  { %1544 = shalt.err (!%p1541_p7)
}
  0x12   :  { %s1619_s29 = smov 128   ;;  %s1620_s30 = smov 8  }
  0x13   :  { %50 = dma.hbm_to_vmem [thread:$0]  %s1880_s5, 4096, %s45_s18, [#allocation7], %s1619_s29, %s1619_s29, %s1620_s30  }
  0x14   :  { %s1545_s16 = scalar_lea.hbm %s1878_s3, 4096 }
  0x15   :  { %p1546_p8 = scmp.ne.s32.totalorder %s1878_s3, %s1545_s16  ;;  %p1549_p9 = scmp.lt.u32.totalorder %s1545_s16, %s1878_s3 }
  0x17   :  { %p1551_p10 = pnand %p1549_p9, %p1546_p8 }
  0x19   :  { %1554 = shalt.err (!%p1551_p10)
}
  0x1a   :  { %s1555_s23 = scalar_lea.vmem %s1685_s20, 4096  ;;  %p1560_p12 = scmp.lt.s32.totalorder %s1685_s20, %s1685_s20 }
  0x1b   :  { %p1556_p11 = scmp.ne.s32.totalorder %s1685_s20, %s1555_s23  ;;  %p1561_p13 = scmp.lt.s32.totalorder %s1555_s23, %s1555_s23 }
  0x1d   :  { %p1562_p0 = por %p1561_p13, %p1560_p12 }
  0x1f   :  { %p1563_p1 = pnand %p1562_p0, %p1556_p11 }
  0x21   :  { %1566 = shalt.err (!%p1563_p1)
}
  0x22   :  { %36 = dma.hbm_to_vmem [thread:$0]  %s1878_s3, 4096, %s1685_s20, [#allocation4], %s1619_s29, %s1619_s29, %s1620_s30  }
  0x23   :  { %s1621_s24 = smov [#allocation8]   ;;  %s1567_s28 = scalar_lea.hbm %s1882_s7, 4096 }
  0x24   :  { %s58_s25 = sshll.u32 %s1621_s24, 4  ;;  %p1568_p2 = scmp.ne.s32.totalorder %s1882_s7, %s1567_s28  ;;  %s59_s25 = int_to_ptr.vmem [resolvable:$true] %s58_s25 }
  0x25   :  { %p1571_p3 = scmp.lt.u32.totalorder %s1567_s28, %s1882_s7 }
  0x27   :  { %p1573_p4 = pnand %p1571_p3, %p1568_p2 }
  0x29   :  { %1576 = shalt.err (!%p1573_p4)
}
  0x2a   :  { %s1577_s16 = scalar_lea.vmem %s59_s25, 4096  ;;  %p1582_p6 = scmp.lt.s32.totalorder %s59_s25, %s59_s25 }
  0x2b   :  { %p1578_p5 = scmp.ne.s32.totalorder %s59_s25, %s1577_s16  ;;  %p1583_p7 = scmp.lt.s32.totalorder %s1577_s16, %s1577_s16 }
  0x2d   :  { %p1584_p8 = por %p1583_p7, %p1582_p6 }
  0x2f   :  { %p1585_p9 = pnand %p1584_p8, %p1578_p5 }
  0x31   :  { %1588 = shalt.err (!%p1585_p9)
}
  0x32   :  { %64 = dma.hbm_to_vmem [thread:$0]  %s1882_s7, 4096, %s59_s25, [#allocation7], %s1619_s29, %s1619_s29, %s1620_s30  }
  0x33   :  { %1611 = dma.done.wait [#allocation4], 4096  }
  0x34   :  { %1612 = vsyncadd [#allocation4], 4294963200 }
  0x35   :  { %1613 = dma.done.wait [#allocation7], 8192  }
  0x36   :  { %1614 = vsyncadd [#allocation7], 4294959104  ;;  %v1622_v0 = vmov 0   ;;  %v1623_v1 = vmov 0.0   ;;  %v1339_v2 = vld [vmem:[%s1876_s1 + $0x4] ss:$8 sps:$4 sm:$0xff]  }
  0x37   :  { %227 = vmatprep.mubr.bf16.mxu0 %v1622_v0  ;;  %81 = vst [vmem:[#allocation2] sm:$0xff] %v1623_v1  ;;  %v1341_v3 = vld [vmem:[%s1876_s1] ss:$8 sps:$4 sm:$0xff]   ;;  %195 = vmatprep.subr.bf16.mxu0 %v1339_v2  ;;  %v1342_v4 = vld [vmem:[%s1876_s1 + $0x14] ss:$8 sps:$4 sm:$0xff]   ;;  %vm83_vm0 = vcmask 171008  }
  0x38   :  { %196 = vmatpush1.bf16.msra.mxu0 %v1341_v3  ;;  %v1344_v5 = vld [vmem:[%s1876_s1 + $0x10] ss:$8 sps:$4 sm:$0xff]   ;;  %v1345_v6 = vld [vmem:[%s1876_s1 + $0x24] ss:$8 sps:$4 sm:$0xff]   ;;  %v1347_v7 = vld [vmem:[%s1876_s1 + $0x20] ss:$8 sps:$4 sm:$0xff]  }
  0x39   :  { %197 = vmatprep.subr.bf16.mxu0 %v1342_v4  ;;  %v1348_v8 = vld [vmem:[%s1876_s1 + $0x34] ss:$8 sps:$4 sm:$0xff]   ;;  %v1350_v9 = vld [vmem:[%s1876_s1 + $0x30] ss:$8 sps:$4 sm:$0xff]   ;;  %v1351_v10 = vld [vmem:[%s1876_s1 + $0x44] ss:$8 sps:$4 sm:$0xff]  }
  0x3a   :  { %v82_v11 = vld [vmem:[%s1875_s0] sm:$0xff]  ;;  %v1363_v12 = vld [vmem:[#allocation3 + $0x4] ss:$8 sps:$4 sm:$0xff]   ;;  %v1365_v13 = vld [vmem:[#allocation3] ss:$8 sps:$4 sm:$0xff]   ;;  %vm1162_vm1 = vcmask 56320  }
  0x3b   :  { %84 = vst.msk [vmem:[#allocation2] sm:$0xff] %vm83_vm0, %v82_v11  ;;  %444 = vmatprep.subr.bf16.mxu1 %v1363_v12  ;;  %v1366_v14 = vld [vmem:[#allocation3 + $0x14] ss:$8 sps:$4 sm:$0xff]   ;;  %v1353_v15 = vld [vmem:[%s1876_s1 + $0x40] ss:$8 sps:$4 sm:$0xff]  }
  0x3c   :  { %198 = vmatpush1.bf16.msra.mxu0 %v1344_v5  ;;  %445 = vmatpush1.bf16.msra.mxu1 %v1365_v13  ;;  %v1368_v16 = vld [vmem:[#allocation3 + $0x10] ss:$8 sps:$4 sm:$0xff]   ;;  %v1369_v17 = vld [vmem:[#allocation3 + $0x24] ss:$8 sps:$4 sm:$0xff]   ;;  %v1371_v20 = vld [vmem:[#allocation3 + $0x20] ss:$8 sps:$4 sm:$0xff]  }
  0x3d   :  { %199 = vmatprep.subr.bf16.mxu0 %v1345_v6  ;;  %446 = vmatprep.subr.bf16.mxu1 %v1366_v14  ;;  %v1354_v18 = vld [vmem:[%s1876_s1 + $0x54] ss:$8 sps:$4 sm:$0xff]   ;;  %v1356_v19 = vld [vmem:[%s1876_s1 + $0x50] ss:$8 sps:$4 sm:$0xff]   ;;  %v1357_v22 = vld [vmem:[%s1876_s1 + $0x64] ss:$8 sps:$4 sm:$0xff]  }
  0x3e   :  { %v1372_v21 = vld [vmem:[#allocation3 + $0x34] ss:$8 sps:$4 sm:$0xff]   ;;  %v1359_v23 = vld [vmem:[%s1876_s1 + $0x60] ss:$8 sps:$4 sm:$0xff]   ;;  %v1375_v25 = vld [vmem:[#allocation3 + $0x44] ss:$8 sps:$4 sm:$0xff]  }
  0x3f   :  { %v1374_v24 = vld [vmem:[#allocation3 + $0x30] ss:$8 sps:$4 sm:$0xff]   ;;  %v1360_v26 = vld [vmem:[%s1876_s1 + $0x74] ss:$8 sps:$4 sm:$0xff]   ;;  %v1377_v28 = vld [vmem:[#allocation3 + $0x40] ss:$8 sps:$4 sm:$0xff]  }
  0x40   :  { %200 = vmatpush1.bf16.msra.mxu0 %v1347_v7  ;;  %447 = vmatpush1.bf16.msra.mxu1 %v1368_v16  ;;  %v1362_v27 = vld [vmem:[%s1876_s1 + $0x70] ss:$8 sps:$4 sm:$0xff]   ;;  %v1378_v30 = vld [vmem:[#allocation3 + $0x54] ss:$8 sps:$4 sm:$0xff]   ;;  %v1381_v33 = vld [vmem:[#allocation3 + $0x64] ss:$8 sps:$4 sm:$0xff]  }
  0x41   :  { %201 = vmatprep.subr.bf16.mxu0 %v1348_v8  ;;  %448 = vmatprep.subr.bf16.mxu1 %v1369_v17  ;;  %v1380_v31 = vld [vmem:[#allocation3 + $0x50] ss:$8 sps:$4 sm:$0xff]   ;;  %v1383_v34 = vld [vmem:[#allocation3 + $0x60] ss:$8 sps:$4 sm:$0xff]   ;;  %v1384_v35 = vld [vmem:[#allocation3 + $0x74] ss:$8 sps:$4 sm:$0xff]   ;;  %v105_v17 = vlaneseq }
  0x42   :  { %v85_v29 = vld [vmem:[#allocation2] sm:$0xff]  ;;  %v1387_v37 = vld [vmem:[#allocation3 + $0x84] ss:$8 sps:$4 sm:$0xff]   ;;  %v1389_v38 = vld [vmem:[#allocation3 + $0x80] ss:$8 sps:$4 sm:$0xff]  }
  0x43   :  { %v86_v32 = vpack.c.bf16 %v85_v29, %v85_v29  ;;  %v1386_v36 = vld [vmem:[#allocation3 + $0x70] ss:$8 sps:$4 sm:$0xff]   ;;  %v1390_v39 = vld [vmem:[#allocation3 + $0x94] ss:$8 sps:$4 sm:$0xff]   ;;  %v1393_v41 = vld [vmem:[#allocation3 + $0xa4] ss:$8 sps:$4 sm:$0xff]  }
  0x44   :  { %202 = vmatpush1.bf16.msra.mxu0 %v1350_v9  ;;  %449 = vmatpush1.bf16.msra.mxu1 %v1371_v20  ;;  %v1392_v40 = vld [vmem:[#allocation3 + $0x90] ss:$8 sps:$4 sm:$0xff]   ;;  %v1395_v42 = vld [vmem:[#allocation3 + $0xa0] ss:$8 sps:$4 sm:$0xff]   ;;  %v1396_v43 = vld [vmem:[#allocation3 + $0xb4] ss:$8 sps:$4 sm:$0xff]  }
  0x45   :  { %203 = vmatprep.subr.bf16.mxu0 %v1351_v10  ;;  %450 = vmatprep.subr.bf16.mxu1 %v1372_v21  ;;  %v1398_v44 = vld [vmem:[#allocation3 + $0xb0] ss:$8 sps:$4 sm:$0xff]   ;;  %v1399_v45 = vld [vmem:[#allocation3 + $0xc4] ss:$8 sps:$4 sm:$0xff]   ;;  %v1401_v46 = vld [vmem:[#allocation3 + $0xc0] ss:$8 sps:$4 sm:$0xff]  }
  0x46   :  { %v1402_v47 = vld [vmem:[#allocation3 + $0xd4] ss:$8 sps:$4 sm:$0xff]   ;;  %v1404_v48 = vld [vmem:[#allocation3 + $0xd0] ss:$8 sps:$4 sm:$0xff]   ;;  %v1405_v49 = vld [vmem:[#allocation3 + $0xe4] ss:$8 sps:$4 sm:$0xff]  }
  0x47   :  { %v1407_v50 = vld [vmem:[#allocation3 + $0xe0] ss:$8 sps:$4 sm:$0xff]   ;;  %v1408_v51 = vld [vmem:[#allocation3 + $0xf4] ss:$8 sps:$4 sm:$0xff]   ;;  %v1410_v52 = vld [vmem:[#allocation3 + $0xf0] ss:$8 sps:$4 sm:$0xff]  }
  0x48   :  { %204 = vmatpush1.bf16.msra.mxu0 %v1353_v15  ;;  %451 = vmatpush1.bf16.msra.mxu1 %v1374_v24  ;;  %v1411_v53 = vld [vmem:[#allocation6] ss:$8 sps:$4 sm:$0xff]   ;;  %v1413_v54 = vld [vmem:[#allocation6 + $0x4] ss:$8 sps:$4 sm:$0xff]   ;;  %v1416_v55 = vld [vmem:[#allocation6 + $0x14] ss:$8 sps:$4 sm:$0xff]  }
  0x49   :  { %205 = vmatprep.subr.bf16.mxu0 %v1354_v18  ;;  %452 = vmatprep.subr.bf16.mxu1 %v1375_v25  ;;  %v1414_v56 = vld [vmem:[#allocation6 + $0x10] ss:$8 sps:$4 sm:$0xff]   ;;  %v1419_v57 = vld [vmem:[#allocation6 + $0x24] ss:$8 sps:$4 sm:$0xff]   ;;  %v1417_v58 = vld [vmem:[#allocation6 + $0x20] ss:$8 sps:$4 sm:$0xff]  }
  0x4a   :  { %v1422_v59 = vld [vmem:[#allocation6 + $0x34] ss:$8 sps:$4 sm:$0xff]   ;;  %v1420_v60 = vld [vmem:[#allocation6 + $0x30] ss:$8 sps:$4 sm:$0xff]   ;;  %v1425_v61 = vld [vmem:[#allocation6 + $0x44] ss:$8 sps:$4 sm:$0xff]  }
  0x4b   :  { %v1423_v62 = vld [vmem:[#allocation6 + $0x40] ss:$8 sps:$4 sm:$0xff]   ;;  %v1428_v63 = vld [vmem:[#allocation6 + $0x54] ss:$8 sps:$4 sm:$0xff]   ;;  %v1426_v0 = vld [vmem:[#allocation6 + $0x50] ss:$8 sps:$4 sm:$0xff]  }
  0x4c   :  { %206 = vmatpush1.bf16.msra.mxu0 %v1356_v19  ;;  %453 = vmatpush1.bf16.msra.mxu1 %v1377_v28  ;;  %v1431_v1 = vld [vmem:[#allocation6 + $0x64] ss:$8 sps:$4 sm:$0xff]   ;;  %v1429_v2 = vld [vmem:[#allocation6 + $0x60] ss:$8 sps:$4 sm:$0xff]   ;;  %v1434_v3 = vld [vmem:[#allocation6 + $0x74] ss:$8 sps:$4 sm:$0xff]  }
  0x4d   :  { %207 = vmatprep.subr.bf16.mxu0 %v1357_v22  ;;  %454 = vmatprep.subr.bf16.mxu1 %v1378_v30  ;;  %v1432_v4 = vld [vmem:[#allocation6 + $0x70] ss:$8 sps:$4 sm:$0xff]   ;;  %v1437_v5 = vld [vmem:[#allocation6 + $0x84] ss:$8 sps:$4 sm:$0xff]   ;;  %v1435_v6 = vld [vmem:[#allocation6 + $0x80] ss:$8 sps:$4 sm:$0xff]  }
  0x4e   :  { %v1440_v7 = vld [vmem:[#allocation6 + $0x94] ss:$8 sps:$4 sm:$0xff]   ;;  %v1438_v8 = vld [vmem:[#allocation6 + $0x90] ss:$8 sps:$4 sm:$0xff]   ;;  %v1443_v9 = vld [vmem:[#allocation6 + $0xa4] ss:$8 sps:$4 sm:$0xff]  }
  0x4f   :  { %v1441_v10 = vld [vmem:[#allocation6 + $0xa0] ss:$8 sps:$4 sm:$0xff]   ;;  %v1446_v11 = vld [vmem:[#allocation6 + $0xb4] ss:$8 sps:$4 sm:$0xff]   ;;  %v1444_v12 = vld [vmem:[#allocation6 + $0xb0] ss:$8 sps:$4 sm:$0xff]  }
  0x50   :  { %208 = vmatpush1.bf16.msra.mxu0 %v1359_v23  ;;  %455 = vmatpush1.bf16.msra.mxu1 %v1380_v31  ;;  %v1449_v13 = vld [vmem:[#allocation6 + $0xc4] ss:$8 sps:$4 sm:$0xff]   ;;  %v1447_v14 = vld [vmem:[#allocation6 + $0xc0] ss:$8 sps:$4 sm:$0xff]   ;;  %v1452_v15 = vld [vmem:[#allocation6 + $0xd4] ss:$8 sps:$4 sm:$0xff]  }
  0x51   :  { %209 = vmatprep.subr.bf16.mxu0 %v1360_v26  ;;  %456 = vmatprep.subr.bf16.mxu1 %v1381_v33  ;;  %v1450_v16 = vld [vmem:[#allocation6 + $0xd0] ss:$8 sps:$4 sm:$0xff]   ;;  %v106_v18 = vshrl.u32 %v105_v17, 7  ;;  %v1506_v17 = vld [vmem:[#allocation8 + $0xf4] ss:$8 sps:$4 sm:$0xff]  }
  0x52   :  { %v103_v20 = vld [vmem:[%s1877_s2] sm:$0x3] }
  0x53   :  { %v1788_v19 = vsub.s32 0, %v106_v18  ;;  %v1793_v21 = vsub.s32 1, %v106_v18  ;;  %v1504_v18 = vld [vmem:[#allocation8 + $0xf0] ss:$8 sps:$4 sm:$0xff]  }
  0x54   :  { %210 = vmatpush1.bf16.msra.mxu0 %v1362_v27  ;;  %457 = vmatpush1.bf16.msra.mxu1 %v1383_v34  ;;  %v1455_v34 = vld [vmem:[#allocation6 + $0xe4] ss:$8 sps:$4 sm:$0xff]  }
  0x55   :  { %458 = vmatprep.subr.bf16.mxu1 %v1384_v35  ;;  %693 = vmatprep.subr.bf16.mxu0 %v1413_v54  ;;  %v108_v22 = vrot.slane %v103_v20, %v1788_v19  ;;  %v112_v23 = vrot.slane %v103_v20, %v1793_v21  ;;  %v1453_v35 = vld [vmem:[#allocation6 + $0xe0] ss:$8 sps:$4 sm:$0xff]   ;;  %v1485_v54 = vld [vmem:[#allocation8 + $0x84] ss:$8 sps:$4 sm:$0xff]   ;;  %v1507_v20 = vld [vmem:[%s1884_s9 + $0x40] sm:$0xff]  }
  0x57   :  { %228 = vmatmul.mubr.bf16.vlgmr.msra.gmra.mrb[0].mxu0 %v86_v32 }
  0x58   :  { %459 = vmatpush1.bf16.msra.mxu1 %v1386_v36  ;;  %694 = vmatpush1.bf16.msra.mxu0 %v1411_v53  ;;  %v1458_v36 = vld [vmem:[#allocation6 + $0xf4] ss:$8 sps:$4 sm:$0xff]   ;;  %v1480_v53 = vld [vmem:[#allocation8 + $0x70] ss:$8 sps:$4 sm:$0xff]  }
  0x59   :  { %460 = vmatprep.subr.bf16.mxu1 %v1387_v37  ;;  %695 = vmatprep.subr.bf16.mxu0 %v1416_v55  ;;  %v1456_v37 = vld [vmem:[#allocation6 + $0xf0] ss:$8 sps:$4 sm:$0xff]   ;;  %v1483_v55 = vld [vmem:[#allocation8 + $0x80] ss:$8 sps:$4 sm:$0xff]  }
  0x5c   :  { %461 = vmatpush1.bf16.msra.mxu1 %v1389_v38  ;;  %696 = vmatpush1.bf16.msra.mxu0 %v1414_v56  ;;  %v1459_v38 = vld [vmem:[#allocation8] ss:$8 sps:$4 sm:$0xff]   ;;  %v1488_v56 = vld [vmem:[#allocation8 + $0x94] ss:$8 sps:$4 sm:$0xff]  }
  0x5d   :  { %462 = vmatprep.subr.bf16.mxu1 %v1390_v39  ;;  %697 = vmatprep.subr.bf16.mxu0 %v1419_v57  ;;  %v1461_v39 = vld [vmem:[#allocation8 + $0x4] ss:$8 sps:$4 sm:$0xff]   ;;  %v1486_v57 = vld [vmem:[#allocation8 + $0x90] ss:$8 sps:$4 sm:$0xff]  }
  0x60   :  { %463 = vmatpush1.bf16.msra.mxu1 %v1392_v40  ;;  %698 = vmatpush1.bf16.msra.mxu0 %v1417_v58  ;;  %v1464_v40 = vld [vmem:[#allocation8 + $0x14] ss:$8 sps:$4 sm:$0xff]   ;;  %v1491_v58 = vld [vmem:[#allocation8 + $0xa4] ss:$8 sps:$4 sm:$0xff]  }
  0x61   :  { %464 = vmatprep.subr.bf16.mxu1 %v1393_v41  ;;  %699 = vmatprep.subr.bf16.mxu0 %v1422_v59  ;;  %v1462_v41 = vld [vmem:[#allocation8 + $0x10] ss:$8 sps:$4 sm:$0xff]   ;;  %v1489_v59 = vld [vmem:[#allocation8 + $0xa0] ss:$8 sps:$4 sm:$0xff]  }
  0x64   :  { %465 = vmatpush1.bf16.msra.mxu1 %v1395_v42  ;;  %700 = vmatpush1.bf16.msra.mxu0 %v1420_v60  ;;  %v1467_v42 = vld [vmem:[#allocation8 + $0x24] ss:$8 sps:$4 sm:$0xff]   ;;  %v1494_v60 = vld [vmem:[#allocation8 + $0xb4] ss:$8 sps:$4 sm:$0xff]  }
  0x65   :  { %466 = vmatprep.subr.bf16.mxu1 %v1396_v43  ;;  %701 = vmatprep.subr.bf16.mxu0 %v1425_v61  ;;  %v1465_v43 = vld [vmem:[#allocation8 + $0x20] ss:$8 sps:$4 sm:$0xff]   ;;  %v1492_v61 = vld [vmem:[#allocation8 + $0xb0] ss:$8 sps:$4 sm:$0xff]  }
  0x68   :  { %467 = vmatpush1.bf16.msra.mxu1 %v1398_v44  ;;  %702 = vmatpush1.bf16.msra.mxu0 %v1423_v62  ;;  %v1470_v44 = vld [vmem:[#allocation8 + $0x34] ss:$8 sps:$4 sm:$0xff]   ;;  %v1497_v62 = vld [vmem:[#allocation8 + $0xc4] ss:$8 sps:$4 sm:$0xff]  }
  0x69   :  { %468 = vmatprep.subr.bf16.mxu1 %v1399_v45  ;;  %703 = vmatprep.subr.bf16.mxu0 %v1428_v63  ;;  %v1468_v45 = vld [vmem:[#allocation8 + $0x30] ss:$8 sps:$4 sm:$0xff]   ;;  %v1495_v63 = vld [vmem:[#allocation8 + $0xc0] ss:$8 sps:$4 sm:$0xff]  }
  0x6c   :  { %469 = vmatpush1.bf16.msra.mxu1 %v1401_v46  ;;  %704 = vmatpush1.bf16.msra.mxu0 %v1426_v0  ;;  %v1473_v46 = vld [vmem:[#allocation8 + $0x44] ss:$8 sps:$4 sm:$0xff]   ;;  %v1500_v0 = vld [vmem:[#allocation8 + $0xd4] ss:$8 sps:$4 sm:$0xff]  }
  0x6d   :  { %470 = vmatprep.subr.bf16.mxu1 %v1402_v47  ;;  %705 = vmatprep.subr.bf16.mxu0 %v1431_v1  ;;  %v1471_v47 = vld [vmem:[#allocation8 + $0x40] ss:$8 sps:$4 sm:$0xff]   ;;  %v1498_v1 = vld [vmem:[#allocation8 + $0xd0] ss:$8 sps:$4 sm:$0xff]  }
  0x70   :  { %471 = vmatpush1.bf16.msra.mxu1 %v1404_v48  ;;  %706 = vmatpush1.bf16.msra.mxu0 %v1429_v2  ;;  %v1476_v48 = vld [vmem:[#allocation8 + $0x54] ss:$8 sps:$4 sm:$0xff]   ;;  %v272_v2 = vld [vmem:[%s1879_s4] sm:$0x3] }
  0x71   :  { %472 = vmatprep.subr.bf16.mxu1 %v1405_v49  ;;  %707 = vmatprep.subr.bf16.mxu0 %v1434_v3  ;;  %v1474_v49 = vld [vmem:[#allocation8 + $0x50] ss:$8 sps:$4 sm:$0xff]   ;;  %v277_v3 = vrot.slane %v272_v2, %v1788_v19 }
  0x74   :  { %473 = vmatpush1.bf16.msra.mxu1 %v1407_v50  ;;  %708 = vmatpush1.bf16.msra.mxu0 %v1432_v4  ;;  %v1479_v50 = vld [vmem:[#allocation8 + $0x64] ss:$8 sps:$4 sm:$0xff]   ;;  %v281_v4 = vrot.slane %v272_v2, %v1793_v21 }
  0x75   :  { %474 = vmatprep.subr.bf16.mxu1 %v1408_v51  ;;  %709 = vmatprep.subr.bf16.mxu0 %v1437_v5  ;;  %v1477_v51 = vld [vmem:[#allocation8 + $0x60] ss:$8 sps:$4 sm:$0xff]  }
  0x78   :  { %475 = vmatpush1.bf16.msra.mxu1 %v1410_v52  ;;  %710 = vmatpush1.bf16.msra.mxu0 %v1435_v6  ;;  %v1482_v52 = vld [vmem:[#allocation8 + $0x74] ss:$8 sps:$4 sm:$0xff]  }
  0x79   :  { %711 = vmatprep.subr.bf16.mxu0 %v1440_v7  ;;  %942 = vmatprep.subr.bf16.mxu1 %v1461_v39 }
  0x7c   :  { %712 = vmatpush1.bf16.msra.mxu0 %v1438_v8 }
  0x7d   :  { %713 = vmatprep.subr.bf16.mxu0 %v1443_v9 }
  0x80   :  { %714 = vmatpush1.bf16.msra.mxu0 %v1441_v10 }
  0x81   :  { %715 = vmatprep.subr.bf16.mxu0 %v1446_v11 }
  0x84   :  { %716 = vmatpush1.bf16.msra.mxu0 %v1444_v12 }
  0x85   :  { %717 = vmatprep.subr.bf16.mxu0 %v1449_v13 }
  0x88   :  { %718 = vmatpush1.bf16.msra.mxu0 %v1447_v14 }
  0x89   :  { %719 = vmatprep.subr.bf16.mxu0 %v1452_v15  ;;  %v1503_v15 = vld [vmem:[#allocation8 + $0xe4] ss:$8 sps:$4 sm:$0xff]  }
  0x8c   :  { %720 = vmatpush1.bf16.msra.mxu0 %v1450_v16  ;;  %v1501_v16 = vld [vmem:[#allocation8 + $0xe0] ss:$8 sps:$4 sm:$0xff]  }
  0x8d   :  { %721 = vmatprep.subr.bf16.mxu0 %v1455_v34 }
  0x90   :  { %722 = vmatpush1.bf16.msra.mxu0 %v1453_v35 }
  0x91   :  { %723 = vmatprep.subr.bf16.mxu0 %v1458_v36 }
  0x94   :  { %724 = vmatpush1.bf16.msra.mxu0 %v1456_v37 }
  0x95   :  { %1309 = vmatprep.subr.bf16.mxu0 %v1507_v20 }
 0x12a   :  { %v229_v24 = vpop.f32.mrb[0].mxu0 }
 0x12b   :  { %v230_v25 = vadd.f32 %v229_v24, %v108_v22  ;;  %v231_v26 = vpop.f32.mrb[1].mxu0  ;;  %v1508_v22 = vld [vmem:[%s1884_s9] sm:$0xff]   ;;  %v1510_v24 = vld [vmem:[%s1884_s9 + $0x8] sm:$0xff]  }
 0x12c   :  { %v232_v27 = vadd.f32 %v231_v26, %v112_v23  ;;  %v233_v28 = vpop.f32.mrb[2].mxu0  ;;  %v1509_v23 = vld [vmem:[%s1884_s9 + $0x48] sm:$0xff]   ;;  %v1512_v26 = vld [vmem:[%s1884_s9 + $0x10] sm:$0xff]  }
 0x12d   :  { %v236_v29 = vmax.f32 %v230_v25, 0.0  ;;  %v234_v30 = vpop.f32.mrb[3].mxu0  ;;  %v1511_v25 = vld [vmem:[%s1884_s9 + $0x50] sm:$0xff]   ;;  %v1514_v28 = vld [vmem:[%s1884_s9 + $0x18] sm:$0xff]  }
 0x12e   :  { %v237_v31 = vmax.f32 %v232_v27, 0.0  ;;  %v1513_v27 = vld [vmem:[%s1884_s9 + $0x58] sm:$0xff]   ;;  %v1516_v30 = vld [vmem:[%s1884_s9 + $0x20] sm:$0xff]  }
 0x12f   :  { %v238_v33 = vpack.c.bf16 %v236_v29, %v236_v29  ;;  %v1515_v29 = vld [vmem:[%s1884_s9 + $0x60] sm:$0xff]  }
 0x130   :  { %v239_v32 = vpack.c.bf16 %v237_v31, %v237_v31  ;;  %v1517_v31 = vld [vmem:[%s1884_s9 + $0x68] sm:$0xff]  }
 0x132   :  { %476 = vmatprep.mubr.bf16.mxu1 %v239_v32  ;;  %v1518_v32 = vld [vmem:[%s1884_s9 + $0x28] sm:$0xff]  }
 0x133   :  { %477 = vmatmul.mubr.bf16.vlgmr.msra.gmra.mrb[0].mxu1 %v238_v33  ;;  %v521_v33 = vld [vmem:[%s1881_s6] sm:$0x3] }
 0x134   :  { %943 = vmatpush1.bf16.msra.mxu1 %v1459_v38  ;;  %v526_v34 = vrot.slane %v521_v33, %v1788_v19  ;;  %v530_v35 = vrot.slane %v521_v33, %v1793_v21 }
 0x135   :  { %944 = vmatprep.subr.bf16.mxu1 %v1464_v40 }
 0x138   :  { %945 = vmatpush1.bf16.msra.mxu1 %v1462_v41 }
 0x139   :  { %946 = vmatprep.subr.bf16.mxu1 %v1467_v42 }
 0x13c   :  { %947 = vmatpush1.bf16.msra.mxu1 %v1465_v43 }
 0x13d   :  { %948 = vmatprep.subr.bf16.mxu1 %v1470_v44 }
 0x140   :  { %949 = vmatpush1.bf16.msra.mxu1 %v1468_v45 }
 0x141   :  { %950 = vmatprep.subr.bf16.mxu1 %v1473_v46  ;;  %v1519_v46 = vld [vmem:[%s1884_s9 + $0x70] sm:$0xff]  }
 0x144   :  { %951 = vmatpush1.bf16.msra.mxu1 %v1471_v47  ;;  %v1520_v47 = vld [vmem:[%s1884_s9 + $0x30] sm:$0xff]  }
 0x145   :  { %952 = vmatprep.subr.bf16.mxu1 %v1476_v48  ;;  %v1521_v48 = vld [vmem:[%s1884_s9 + $0x78] sm:$0xff]  }
 0x148   :  { %953 = vmatpush1.bf16.msra.mxu1 %v1474_v49  ;;  %v1522_v49 = vld [vmem:[%s1884_s9 + $0x38] sm:$0xff]  }
 0x149   :  { %954 = vmatprep.subr.bf16.mxu1 %v1479_v50  ;;  %v770_v50 = vld [vmem:[%s1883_s8] sm:$0x3]  ;;  %s1624_s8 = smov [#allocation9]  }
 0x14a   :  { %s1170_s17 = sshll.u32 %s1624_s8, 4  ;;  %s1171_s17 = int_to_ptr.vmem [resolvable:$true] %s1170_s17 }
 0x14b   :  { %s1589_s19 = scalar_lea.vmem %s1171_s17, 128  ;;  %p1594_p11 = scmp.lt.s32.totalorder %s1171_s17, %s1171_s17 }
 0x14c   :  { %955 = vmatpush1.bf16.msra.mxu1 %v1477_v51  ;;  %v775_v51 = vrot.slane %v770_v50, %v1788_v19  ;;  %p1590_p10 = scmp.ne.s32.totalorder %s1171_s17, %s1589_s19  ;;  %p1595_p12 = scmp.lt.s32.totalorder %s1589_s19, %s1589_s19 }
 0x14d   :  { %956 = vmatprep.subr.bf16.mxu1 %v1482_v52  ;;  %v779_v52 = vrot.slane %v770_v50, %v1793_v21 }
 0x14e   :  { %p1596_p13 = por %p1595_p12, %p1594_p11 }
 0x150   :  { %957 = vmatpush1.bf16.msra.mxu1 %v1480_v53  ;;  %p1597_p0 = pnand %p1596_p13, %p1590_p10 }
 0x151   :  { %958 = vmatprep.subr.bf16.mxu1 %v1485_v54 }
 0x154   :  { %959 = vmatpush1.bf16.msra.mxu1 %v1483_v55 }
 0x155   :  { %960 = vmatprep.subr.bf16.mxu1 %v1488_v56 }
 0x158   :  { %961 = vmatpush1.bf16.msra.mxu1 %v1486_v57 }
 0x159   :  { %962 = vmatprep.subr.bf16.mxu1 %v1491_v58 }
 0x15c   :  { %963 = vmatpush1.bf16.msra.mxu1 %v1489_v59 }
 0x15d   :  { %964 = vmatprep.subr.bf16.mxu1 %v1494_v60 }
 0x160   :  { %965 = vmatpush1.bf16.msra.mxu1 %v1492_v61 }
 0x161   :  { %966 = vmatprep.subr.bf16.mxu1 %v1497_v62 }
 0x164   :  { %967 = vmatpush1.bf16.msra.mxu1 %v1495_v63 }
 0x165   :  { %968 = vmatprep.subr.bf16.mxu1 %v1500_v0  ;;  %v1292_v0 = vld [vmem:[%s1885_s10] ss:$0 sm:$0xff] }
 0x168   :  { %969 = vmatpush1.bf16.msra.mxu1 %v1498_v1 }
 0x169   :  { %970 = vmatprep.subr.bf16.mxu1 %v1503_v15 }
 0x16c   :  { %971 = vmatpush1.bf16.msra.mxu1 %v1501_v16 }
 0x16d   :  { %972 = vmatprep.subr.bf16.mxu1 %v1506_v17 }
 0x170   :  { %973 = vmatpush1.bf16.msra.mxu1 %v1504_v18 }
 0x206   :  { %v478_v5 = vpop.f32.mrb[0].mxu1 }
 0x207   :  { %v479_v6 = vadd.f32 %v478_v5, %v277_v3  ;;  %v480_v7 = vpop.f32.mrb[1].mxu1 }
 0x208   :  { %v481_v8 = vadd.f32 %v480_v7, %v281_v4  ;;  %v482_v9 = vpop.f32.mrb[2].mxu1 }
 0x209   :  { %v485_v10 = vmax.f32 %v479_v6, 0.0  ;;  %v483_v11 = vpop.f32.mrb[3].mxu1 }
 0x20a   :  { %v486_v12 = vmax.f32 %v481_v8, 0.0 }
 0x20b   :  { %v487_v14 = vpack.c.bf16 %v485_v10, %v485_v10 }
 0x20c   :  { %v488_v13 = vpack.c.bf16 %v486_v12, %v486_v12 }
 0x20e   :  { %725 = vmatprep.mubr.bf16.mxu0 %v488_v13 }
 0x20f   :  { %726 = vmatmul.mubr.bf16.vlgmr.msra.gmra.mrb[4].mxu0 %v487_v14 }
 0x210   :  { %1310 = vmatpush3.bf16.msra.mxu0 %v1508_v22 }
 0x211   :  { %1311 = vmatprep.subr.bf16.mxu0 %v1509_v23 }
 0x214   :  { %1312 = vmatpush3.bf16.msra.mxu0 %v1510_v24 }
 0x215   :  { %1313 = vmatprep.subr.bf16.mxu0 %v1511_v25 }
 0x218   :  { %1314 = vmatpush3.bf16.msra.mxu0 %v1512_v26 }
 0x219   :  { %1315 = vmatprep.subr.bf16.mxu0 %v1513_v27 }
 0x21c   :  { %1316 = vmatpush3.bf16.msra.mxu0 %v1514_v28 }
 0x21d   :  { %1317 = vmatprep.subr.bf16.mxu0 %v1515_v29 }
 0x220   :  { %1318 = vmatpush3.bf16.msra.mxu0 %v1516_v30 }
 0x221   :  { %1319 = vmatprep.subr.bf16.mxu0 %v1517_v31 }
 0x224   :  { %1320 = vmatpush3.bf16.msra.mxu0 %v1518_v32 }
 0x225   :  { %1321 = vmatprep.subr.bf16.mxu0 %v1519_v46 }
 0x228   :  { %1322 = vmatpush3.bf16.msra.mxu0 %v1520_v47 }
 0x229   :  { %1323 = vmatprep.subr.bf16.mxu0 %v1521_v48 }
 0x22c   :  { %1324 = vmatpush3.bf16.msra.mxu0 %v1522_v49 }
 0x2e2   :  { %v727_v36 = vpop.f32.mrb[4].mxu0 }
 0x2e3   :  { %v728_v37 = vadd.f32 %v727_v36, %v526_v34  ;;  %v729_v38 = vpop.f32.mrb[5].mxu0 }
 0x2e4   :  { %v730_v39 = vadd.f32 %v729_v38, %v530_v35  ;;  %v731_v40 = vpop.f32.mrb[6].mxu0 }
 0x2e5   :  { %v734_v41 = vmax.f32 %v728_v37, 0.0  ;;  %v732_v42 = vpop.f32.mrb[7].mxu0 }
 0x2e6   :  { %v735_v43 = vmax.f32 %v730_v39, 0.0 }
 0x2e7   :  { %v736_v45 = vpack.c.bf16 %v734_v41, %v734_v41 }
 0x2e8   :  { %v737_v44 = vpack.c.bf16 %v735_v43, %v735_v43 }
 0x2ea   :  { %974 = vmatprep.mubr.bf16.mxu1 %v737_v44 }
 0x2eb   :  { %975 = vmatmul.mubr.bf16.vlgmr.msra.gmra.mrb[4].mxu1 %v736_v45 }
 0x3be   :  { %v976_v53 = vpop.f32.mrb[4].mxu1 }
 0x3bf   :  { %v977_v54 = vadd.f32 %v976_v53, %v775_v51  ;;  %v978_v55 = vpop.f32.mrb[5].mxu1 }
 0x3c0   :  { %v979_v56 = vadd.f32 %v978_v55, %v779_v52  ;;  %v980_v57 = vpop.f32.mrb[6].mxu1 }
 0x3c1   :  { %v983_v58 = vmax.f32 %v977_v54, 0.0  ;;  %v981_v59 = vpop.f32.mrb[7].mxu1 }
 0x3c2   :  { %v984_v60 = vmax.f32 %v979_v56, 0.0 }
 0x3c3   :  { %v985_v62 = vpack.c.bf16 %v983_v58, %v983_v58 }
 0x3c4   :  { %v986_v61 = vpack.c.bf16 %v984_v60, %v984_v60 }
 0x3c6   :  { %1154 = vmatprep.mubr.bf16.mxu0 %v986_v61 }
 0x3c7   :  { %1155 = vmatmul.mubr.bf16.vlgmr.msra.gmra.mrb[8].mxu0 %v985_v62 }
 0x49a   :  { %v1325_v63 = vpop.f32.mrb[8].mxu0 }
 0x49b   :  { %v1326_v19 = vpop.f32.mrb[9].mxu0 }
 0x49c   :  { %v1327_v21 = vadd.f32 %v1326_v19, %v1325_v63  ;;  %v1328_v1 = vpop.f32.mrb[10].mxu0 }
 0x49d   :  { %v1329_v2 = vpop.f32.mrb[11].mxu0 }
 0x49e   :  { %v1157_v3 = vadd.f32 %v1327_v21, %v1292_v0 }
 0x4a0   :  { %1163 = vst.msk [vmem:[#allocation9] sm:$0xff] %vm1162_vm1, %v1157_v3 }
 0x4a1   :  { %1600 = shalt.err (!%p1597_p0)
}
 0x4a2   :  { %s1601_s10 = scalar_lea.hbm %s1886_s11, 128 }
 0x4a3   :  { %p1602_p1 = scmp.ne.s32.totalorder %s1886_s11, %s1601_s10  ;;  %p1605_p2 = scmp.lt.u32.totalorder %s1601_s10, %s1886_s11 }
 0x4a5   :  { %p1607_p3 = pnand %p1605_p2, %p1602_p1 }
 0x4a7   :  { %1610 = shalt.err (!%p1607_p3)
}
 0x4a8   :  { %1173 = dma.vmem_to_hbm [thread:$0]  %s1171_s17, 128, %s1886_s11, [#allocation5]  }
 0x4a9   :  { %1615 = dma.done.wait [#allocation5], 128  }
 0x4aa   :  { %1616 = vsyncadd [#allocation5], 4294967168 }
 0x4ab   :  { %1177 = vsyncpa [#allocation4], 1 }
 0x4ac   :  { %1178 = vsyncpa [#allocation7], 1 }
 0x4ad   :  { %1179 = vsyncpa [#allocation5], 1 }

</bundles_post_ra>
